<compile_context>
chip_gen: v7x
topology: tpu7x:2x2x1
jax: 0.10.0
libtpu: 0.0.40
codegen_flags: <defaults>
</compile_context>

<pallas_src>
import jax
import jax.numpy as jnp
import numpy as np
from jax import lax
from jax.experimental import pallas as pl
from jax.experimental.pallas import tpu as pltpu


def _round_up(x, m):
    return ((x + m - 1) // m) * m


# ---------------------------------------------------------------------------
# Embedding gather: out[b, :] = table[idx[b], :] via exact one-hot matmul.
# ---------------------------------------------------------------------------
def _gather_kernel(idx_ref, tbl_ref, out_ref):
    num_rows = tbl_ref.shape[0]
    blk = out_ref.shape[0]
    idx = idx_ref[...]                                              # [blk, 1] int32
    row_ids = lax.broadcasted_iota(jnp.int32, (blk, num_rows), 1)   # [blk, num_rows]
    onehot = (idx == row_ids).astype(tbl_ref.dtype)                 # exact 0/1 rows
    # Exactly one 1.0 per row -> result is an exact row gather, done on the MXU.
    out_ref[...] = jnp.dot(onehot, tbl_ref[...],
                           preferred_element_type=jnp.float32).astype(out_ref.dtype)


def _embedding_gather(idx_pad, table, blk):
    b_pad = idx_pad.shape[0]
    num_rows, n_out = table.shape
    return pl.pallas_call(
        _gather_kernel,
        out_shape=jax.ShapeDtypeStruct((b_pad, n_out), table.dtype),
        grid=(b_pad // blk,),
        in_specs=[
            pl.BlockSpec((blk, 1), lambda b: (b, 0)),            # index block
            pl.BlockSpec((num_rows, n_out), lambda b: (0, 0)),   # whole table, VMEM-resident
        ],
        out_specs=pl.BlockSpec((blk, n_out), lambda b: (b, 0)),
        compiler_params=pltpu.CompilerParams(
            dimension_semantics=("parallel",)),
    )(idx_pad, table)


# ---------------------------------------------------------------------------
# Score: users_e @ items_e.T, tiled over (Bu/tm, Bi/tn) with lane-dense tiles.
# ---------------------------------------------------------------------------
def _score_kernel(u_ref, v_ref, o_ref):
    o_ref[...] = lax.dot_general(
        u_ref[...], v_ref[...],
        dimension_numbers=(((1,), (1,)), ((), ())),
        preferred_element_type=jnp.float32).astype(o_ref.dtype)


def _score_matmul(users_e, items_e, tm, tn):
    bu_pad, n_out = users_e.shape
    bi_pad, _ = items_e.shape
    return pl.pallas_call(
        _score_kernel,
        out_shape=jax.ShapeDtypeStruct((bu_pad, bi_pad), jnp.float32),
        grid=(bu_pad // tm, bi_pad // tn),
        in_specs=[
            pl.BlockSpec((tm, n_out), lambda i, j: (i, 0)),
            pl.BlockSpec((tn, n_out), lambda i, j: (j, 0)),
        ],
        out_specs=pl.BlockSpec((tm, tn), lambda i, j: (i, j)),
        compiler_params=pltpu.CompilerParams(
            dimension_semantics=("parallel", "parallel")),
    )(users_e, items_e)


# ---------------------------------------------------------------------------
# Forward wrapper (matches MF.forward).
# ---------------------------------------------------------------------------
def mf_forward(users, items, user_weight, item_weight):
    users = users.astype(jnp.int32)
    items = items.astype(jnp.int32)
    bu = int(users.shape[0])
    bi = int(items.shape[0])
    n_out = int(user_weight.shape[1])

    # Tile sizes: user axis (sublanes) multiple of 8, item axis (lanes) multiple
    # of 128 so score stores are unmasked / lane-dense. Caps keep the f32 score
    # tile well inside VMEM on all generations (incl. v7x's 64 MiB).
    tm = 256 if bu >= 256 else _round_up(bu, 8)
    tn = 512 if bi >= 512 else _round_up(bi, 128)
    bu_pad = _round_up(bu, tm)
    bi_pad = _round_up(bi, tn)

    # Pad index vectors with 0 (a valid row); padded rows are sliced off below.
    users_p = jnp.zeros((bu_pad, 1), jnp.int32).at[:bu, 0].set(users)
    items_p = jnp.zeros((bi_pad, 1), jnp.int32).at[:bi, 0].set(items)

    users_e_pad = _embedding_gather(users_p, user_weight, tm)
    items_e_pad = _embedding_gather(items_p, item_weight, tn)
    score_pad = _score_matmul(users_e_pad, items_e_pad, tm, tn)

    return (users_e_pad[:bu], items_e_pad[:bi], score_pad[:bu, :bi])


if __name__ == "__main__":
    # Small deterministic setup consistent with the module.
    user_num, item_num, n_out = 64, 48, 32
    batch_users, batch_items = 8, 8

    key = jax.random.PRNGKey(0)
    k_uw, k_iw, k_u, k_i = jax.random.split(key, 4)

    # nn.Embedding weights with normal_(std=0.1)
    user_weight = (0.1 * jax.random.normal(k_uw, (user_num, n_out))).astype(jnp.float32)
    item_weight = (0.1 * jax.random.normal(k_iw, (item_num, n_out))).astype(jnp.float32)

    users = jax.random.randint(k_u, (batch_users,), 0, user_num, dtype=jnp.int32)
    items = jax.random.randint(k_i, (batch_items,), 0, item_num, dtype=jnp.int32)

    users_e, items_e, score = jax.jit(mf_forward)(users, items, user_weight, item_weight)
    jax.block_until_ready((users_e, items_e, score))

    # Reference check (plain JAX)
    ref_u = jnp.take(user_weight, users, axis=0)
    ref_i = jnp.take(item_weight, items, axis=0)
    ref_s = ref_u @ ref_i.T
    assert np.allclose(np.asarray(users_e), np.asarray(ref_u), atol=1e-5)
    assert np.allclose(np.asarray(items_e), np.asarray(ref_i), atol=1e-5)
    assert np.allclose(np.asarray(score), np.asarray(ref_s), atol=1e-5)

    print("KERNEL_OK")
</pallas_src>

<mosaic_0001>
module attributes {stable_mosaic.version = 11 : i64} {
  func.func @_gather_kernel(%arg0: i32, %arg1: memref<128x1xi32, #tpu.memory_space<vmem>>, %arg2: memref<48x32xf32, #tpu.memory_space<vmem>>, %arg3: memref<128x32xf32, #tpu.memory_space<vmem>>) attributes {dimension_semantics = [#tpu.dimension_semantics<parallel>], iteration_bounds = array<i64: 1>, scalar_prefetch = 0 : i64, scratch_operands = 0 : i64, tpu.core_type = #tpu.core_type<tc>, window_params = [{transform_indices = @transform_0, window_bounds = array<i64: 128, 1>}, {pipeline_mode = #tpu.pipeline_mode<synchronous>, transform_indices = @transform_1, window_bounds = array<i64: 48, 32>}, {transform_indices = @transform_2, window_bounds = array<i64: 128, 32>}]} {
    %c0 = arith.constant 0 : index
    %c0_0 = arith.constant 0 : index
    %0 = vector.load %arg1[%c0, %c0_0] : memref<128x1xi32, #tpu.memory_space<vmem>>, vector<128x1xi32>
    %1 = tpu.iota {dimensions = array<i32: 1>} : vector<128x48xi32>
    %2 = vector.broadcast %0 : vector<128x1xi32> to vector<128x48xi32>
    %3 = arith.cmpi eq, %2, %1 : vector<128x48xi32>
    %4 = arith.extui %3 : vector<128x48xi1> to vector<128x48xi32>
    %5 = arith.sitofp %4 : vector<128x48xi32> to vector<128x48xf32>
    %c0_1 = arith.constant 0 : index
    %c0_2 = arith.constant 0 : index
    %6 = vector.load %arg2[%c0_1, %c0_2] : memref<48x32xf32, #tpu.memory_space<vmem>>, vector<48x32xf32>
    %cst = arith.constant dense<0.000000e+00> : vector<128x32xf32>
    %7 = tpu.matmul %5, %6, %cst {dimension_numbers = #tpu.dot_dimension_numbers<[1], [0], [0], [1], [0, 0, 1, 1], [], []>} : vector<128x48xf32>, vector<48x32xf32>, vector<128x32xf32> -> vector<128x32xf32>
    %c0_3 = arith.constant 0 : index
    %c0_4 = arith.constant 0 : index
    %8 = vector.load %arg3[%c0_3, %c0_4] : memref<128x32xf32, #tpu.memory_space<vmem>>, vector<128x32xf32>
    tpu.vector_store %arg3[%c0_3, %c0_4], %7 {strides = array<i32>} : memref<128x32xf32, #tpu.memory_space<vmem>>, vector<128x32xf32>,
    return
  }
  func.func @transform_0(%arg0: i32) -> (i32, i32) {
    %c0_i32 = arith.constant 0 : i32
    %c0_i32_0 = arith.constant 0 : i32
    return %arg0, %c0_i32 : i32, i32
  }
  func.func @transform_1(%arg0: i32) -> (i32, i32) {
    %c0_i32 = arith.constant 0 : i32
    %c0_i32_0 = arith.constant 0 : i32
    %c0_i32_1 = arith.constant 0 : i32
    return %c0_i32, %c0_i32_0 : i32, i32
  }
  func.func @transform_2(%arg0: i32) -> (i32, i32) {
    %c0_i32 = arith.constant 0 : i32
    %c0_i32_0 = arith.constant 0 : i32
    return %arg0, %c0_i32 : i32, i32
  }
}

module attributes {stable_mosaic.version = 11 : i64} {
  func.func @_gather_kernel(%arg0: i32, %arg1: memref<8x1xi32, #tpu.memory_space<vmem>>, %arg2: memref<64x32xf32, #tpu.memory_space<vmem>>, %arg3: memref<8x32xf32, #tpu.memory_space<vmem>>) attributes {dimension_semantics = [#tpu.dimension_semantics<parallel>], iteration_bounds = array<i64: 1>, scalar_prefetch = 0 : i64, scratch_operands = 0 : i64, tpu.core_type = #tpu.core_type<tc>, window_params = [{transform_indices = @transform_0, window_bounds = array<i64: 8, 1>}, {pipeline_mode = #tpu.pipeline_mode<synchronous>, transform_indices = @transform_1, window_bounds = array<i64: 64, 32>}, {transform_indices = @transform_2, window_bounds = array<i64: 8, 32>}]} {
    %c0 = arith.constant 0 : index
    %c0_0 = arith.constant 0 : index
    %0 = vector.load %arg1[%c0, %c0_0] : memref<8x1xi32, #tpu.memory_space<vmem>>, vector<8x1xi32>
    %1 = tpu.iota {dimensions = array<i32: 1>} : vector<8x64xi32>
    %2 = vector.broadcast %0 : vector<8x1xi32> to vector<8x64xi32>
    %3 = arith.cmpi eq, %2, %1 : vector<8x64xi32>
    %4 = arith.extui %3 : vector<8x64xi1> to vector<8x64xi32>
    %5 = arith.sitofp %4 : vector<8x64xi32> to vector<8x64xf32>
    %c0_1 = arith.constant 0 : index
    %c0_2 = arith.constant 0 : index
    %6 = vector.load %arg2[%c0_1, %c0_2] : memref<64x32xf32, #tpu.memory_space<vmem>>, vector<64x32xf32>
    %cst = arith.constant dense<0.000000e+00> : vector<8x32xf32>
    %7 = tpu.matmul %5, %6, %cst {dimension_numbers = #tpu.dot_dimension_numbers<[1], [0], [0], [1], [0, 0, 1, 1], [], []>} : vector<8x64xf32>, vector<64x32xf32>, vector<8x32xf32> -> vector<8x32xf32>
    %c0_3 = arith.constant 0 : index
    %c0_4 = arith.constant 0 : index
    %8 = vector.load %arg3[%c0_3, %c0_4] : memref<8x32xf32, #tpu.memory_space<vmem>>, vector<8x32xf32>
    tpu.vector_store %arg3[%c0_3, %c0_4], %7 {strides = array<i32>} : memref<8x32xf32, #tpu.memory_space<vmem>>, vector<8x32xf32>,
    return
  }
  func.func @transform_0(%arg0: i32) -> (i32, i32) {
    %c0_i32 = arith.constant 0 : i32
    %c0_i32_0 = arith.constant 0 : i32
    return %arg0, %c0_i32 : i32, i32
  }
  func.func @transform_1(%arg0: i32) -> (i32, i32) {
    %c0_i32 = arith.constant 0 : i32
    %c0_i32_0 = arith.constant 0 : i32
    %c0_i32_1 = arith.constant 0 : i32
    return %c0_i32, %c0_i32_0 : i32, i32
  }
  func.func @transform_2(%arg0: i32) -> (i32, i32) {
    %c0_i32 = arith.constant 0 : i32
    %c0_i32_0 = arith.constant 0 : i32
    return %arg0, %c0_i32 : i32, i32
  }
}

module attributes {stable_mosaic.version = 11 : i64} {
  func.func @_score_kernel(%arg0: i32, %arg1: i32, %arg2: memref<8x32xf32, #tpu.memory_space<vmem>>, %arg3: memref<128x32xf32, #tpu.memory_space<vmem>>, %arg4: memref<8x128xf32, #tpu.memory_space<vmem>>) attributes {dimension_semantics = [#tpu.dimension_semantics<parallel>, #tpu.dimension_semantics<parallel>], iteration_bounds = array<i64: 1, 1>, scalar_prefetch = 0 : i64, scratch_operands = 0 : i64, tpu.core_type = #tpu.core_type<tc>, window_params = [{transform_indices = @transform_0, window_bounds = array<i64: 8, 32>}, {transform_indices = @transform_1, window_bounds = array<i64: 128, 32>}, {transform_indices = @transform_2, window_bounds = array<i64: 8, 128>}]} {
    %c0 = arith.constant 0 : index
    %c0_0 = arith.constant 0 : index
    %0 = vector.load %arg2[%c0, %c0_0] : memref<8x32xf32, #tpu.memory_space<vmem>>, vector<8x32xf32>
    %c0_1 = arith.constant 0 : index
    %c0_2 = arith.constant 0 : index
    %1 = vector.load %arg3[%c0_1, %c0_2] : memref<128x32xf32, #tpu.memory_space<vmem>>, vector<128x32xf32>
    %cst = arith.constant dense<0.000000e+00> : vector<8x128xf32>
    %2 = tpu.matmul %0, %1, %cst {dimension_numbers = #tpu.dot_dimension_numbers<[1], [1], [0], [0], [0, 0, 1, 0], [], []>} : vector<8x32xf32>, vector<128x32xf32>, vector<8x128xf32> -> vector<8x128xf32>
    %c0_3 = arith.constant 0 : index
    %c0_4 = arith.constant 0 : index
    %3 = vector.load %arg4[%c0_3, %c0_4] : memref<8x128xf32, #tpu.memory_space<vmem>>, vector<8x128xf32>
    tpu.vector_store %arg4[%c0_3, %c0_4], %2 {strides = array<i32>} : memref<8x128xf32, #tpu.memory_space<vmem>>, vector<8x128xf32>,
    return
  }
  func.func @transform_0(%arg0: i32, %arg1: i32) -> (i32, i32) {
    %c0_i32 = arith.constant 0 : i32
    %c0_i32_0 = arith.constant 0 : i32
    return %arg0, %c0_i32 : i32, i32
  }
  func.func @transform_1(%arg0: i32, %arg1: i32) -> (i32, i32) {
    %c0_i32 = arith.constant 0 : i32
    %c0_i32_0 = arith.constant 0 : i32
    return %arg1, %c0_i32 : i32, i32
  }
  func.func @transform_2(%arg0: i32, %arg1: i32) -> (i32, i32) {
    %c0_i32 = arith.constant 0 : i32
    return %arg0, %arg1 : i32, i32
  }
}

</mosaic_0001>

<bundles_post_ra>
// kernel: mf_forward.3
= control target key start
LH: loop header
LB: loop body
LE: loop exit
PB: predicated region body
PF: predicated region fallthrough
CT: control target
= control target key end

     0   :  { %v155_v0 = vmov 0   ;;  %v156_v2 = vmov 0.0|0.0   ;;  %vm157_vm0 = vmmov 0   ;;  %v158_v8 = vmov 0.0   ;;  %s204_s0 = inlined_call_operand.vmem [shape: s32[8,1], index: 0, kind: input, shape index: {}]   ;;  %s205_s1 = inlined_call_operand.vmem [shape: f32[64,32], index: 1, kind: input, shape index: {}]   ;;  %s206_s2 = inlined_call_operand.vmem [shape: f32[8,32], index: 2, kind: output, shape index: {}]  }
   0x1   :  { %154 = vset.pattern.permute.xlu0 %v155_v0  ;;  %v11_v1 = vld [vmem:[%s204_s0] sm:$0xff]  ;;  %138 = vmatprep.subr.bf16.mxu0 %v156_v2  ;;  %v21_v4 = vld [vmem:[%s205_s1 + $0x8] sm:$0xff]  ;;  %v22_v6 = vld [vmem:[%s205_s1 + $0x10] sm:$0xff]  ;;  %v12_v16 = vlaneseq  ;;  %vm28_vm1 = vcmask 523264   ;;  %vm102_vm3 = vcmask 261120  }
   0x2   :  { %v20_v3 = vld [vmem:[%s205_s1] sm:$0xff]  ;;  %15 = vperm.xlu0 %154, %v11_v1   ;;  %v23_v7 = vld [vmem:[%s205_s1 + $0x18] sm:$0xff]  ;;  %135 = vmatprep.mubr.msk.f32.mxu0 %vm157_vm0, %v158_v8  ;;  %v25_v11 = vld [vmem:[%s205_s1 + $0x28] sm:$0xff] }
   0x3   :  { %v139_v5 = vpack.c.bf16 %v21_v4, %v20_v3  ;;  %v142_v9 = vpack.c.bf16 %v23_v7, %v22_v6  ;;  %v24_v10 = vld [vmem:[%s205_s1 + $0x20] sm:$0xff]  ;;  %v26_v13 = vld [vmem:[%s205_s1 + $0x30] sm:$0xff]  ;;  %v27_v14 = vld [vmem:[%s205_s1 + $0x38] sm:$0xff]  ;;  %v13_v17 = vand.u32 127, %v12_v16 }
   0x4   :  { %v145_v12 = vpack.c.bf16 %v25_v11, %v24_v10  ;;  %v148_v15 = vpack.c.bf16 %v27_v14, %v26_v13 }
   0x5   :  { %140 = vmatpush3.bf16.msra.mxu0 %v139_v5 }
   0x6   :  { %141 = vmatprep.subr.bf16.mxu0 %v156_v2 }
   0x9   :  { %143 = vmatpush3.bf16.msra.mxu0 %v142_v9 }
   0xa   :  { %144 = vmatprep.subr.bf16.mxu0 %v156_v2 }
   0xd   :  { %146 = vmatpush3.bf16.msra.mxu0 %v145_v12 }
   0xe   :  { %147 = vmatprep.subr.bf16.mxu0 %v156_v2 }
  0x11   :  { %149 = vmatpush3.bf16.msra.mxu0 %v148_v15 }
  0x81   :  { %v16_v18 = vpop.permute.xlu0 %15 }
  0x82   :  { %vm17_vm2 = vcmp.eq.s32.totalorder %v16_v18, %v13_v17 }
  0x83   :  { %v108_v19 = vsel %vm17_vm2, 1.0, %v158_v8 }
  0x84   :  { %136 = vmatmul.mubr.msk.f32.vlgmr.msra.gmra.mrb[0].mxu0 %vm28_vm1, %v108_v19 }
 0x157   :  { %v98_v20 = vpop.f32.mrb[0].mxu0 }
 0x158   :  { %103 = vst.msk [vmem:[%s206_s2] sm:$0xff] %vm102_vm3, %v98_v20  ;;  %v137_v21 = vpop.f32.mrb[1].mxu0 }

// kernel: mf_forward.4
= control target key start
LH: loop header
LB: loop body
LE: loop exit
PB: predicated region body
PF: predicated region fallthrough
CT: control target
= control target key end

     0   :  { %v458_v0 = vmov 0   ;;  %v27_v26 = vlaneseq  ;;  %vm131_vm0 = vcmask 392192   ;;  %v459_v30 = vmov 0.0   ;;  %s639_s0 = inlined_call_operand.vmem [shape: s32[128,1], index: 0, kind: input, shape index: {}]   ;;  %s640_s1 = inlined_call_operand.vmem [shape: f32[48,32], index: 1, kind: input, shape index: {}]   ;;  %s641_s2 = inlined_call_operand.vmem [shape: f32[128,32], index: 2, kind: output, shape index: {}]  }
   0x1   :  { %457 = vset.pattern.permute.xlu1 %v458_v0  ;;  %456 = vset.pattern.permute.xlu0 %v458_v0  ;;  %v12_v1 = vld [vmem:[%s639_s0 + $0x8] sm:$0xff]  ;;  %v11_v2 = vld [vmem:[%s639_s0] sm:$0xff]  ;;  %v21_v5 = vld [vmem:[%s639_s0 + $0x50] sm:$0xff] }
   0x2   :  { %33 = vperm.xlu1 %457, %v12_v1   ;;  %30 = vperm.xlu0 %456, %v11_v2   ;;  %v20_v3 = vld [vmem:[%s639_s0 + $0x48] sm:$0xff]  ;;  %v19_v4 = vld [vmem:[%s639_s0 + $0x40] sm:$0xff]  ;;  %v13_v8 = vld [vmem:[%s639_s0 + $0x10] sm:$0xff]  ;;  %v541_v27 = vand.u32 127, %v27_v26 }
   0x3   :  { %v125_v6 = vld [vmem:[%s640_s1] sm:$0xff]  ;;  %v126_v7 = vld [vmem:[%s640_s1 + $0x8] sm:$0xff]  ;;  %v127_v10 = vld [vmem:[%s640_s1 + $0x10] sm:$0xff] }
   0x4   :  { %v436_v9 = vpack.c.bf16 %v126_v7, %v125_v6  ;;  %v128_v11 = vld [vmem:[%s640_s1 + $0x18] sm:$0xff]  ;;  %v129_v13 = vld [vmem:[%s640_s1 + $0x20] sm:$0xff]  ;;  %v130_v14 = vld [vmem:[%s640_s1 + $0x28] sm:$0xff] }
   0x5   :  { %v440_v12 = vpack.c.bf16 %v128_v11, %v127_v10  ;;  %v22_v15 = vld [vmem:[%s639_s0 + $0x58] sm:$0xff]  ;;  %v444_v17 = vpack.c.bf16 %v130_v14, %v129_v13  ;;  %v23_v18 = vld [vmem:[%s639_s0 + $0x60] sm:$0xff]  ;;  %v24_v20 = vld [vmem:[%s639_s0 + $0x68] sm:$0xff] }
   0x6   :  { %57 = vperm.xlu1 %457, %v20_v3   ;;  %54 = vperm.xlu0 %456, %v19_v4   ;;  %v14_v16 = vld [vmem:[%s639_s0 + $0x18] sm:$0xff]  ;;  %v15_v19 = vld [vmem:[%s639_s0 + $0x20] sm:$0xff]  ;;  %v16_v21 = vld [vmem:[%s639_s0 + $0x28] sm:$0xff] }
   0x7   :  { %437 = vmatprep.subr.bf16.mxu0 %v436_v9  ;;  %448 = vmatprep.subr.bf16.mxu1 %v436_v9  ;;  %v25_v22 = vld [vmem:[%s639_s0 + $0x70] sm:$0xff]  ;;  %v26_v24 = vld [vmem:[%s639_s0 + $0x78] sm:$0xff] }
   0x8   :  { %439 = vmatpush3.bf16.msra.mxu0 %v436_v9  ;;  %451 = vmatpush3.bf16.msra.mxu1 %v436_v9  ;;  %v17_v23 = vld [vmem:[%s639_s0 + $0x30] sm:$0xff]  ;;  %v18_v25 = vld [vmem:[%s639_s0 + $0x38] sm:$0xff] }
   0x9   :  { %441 = vmatprep.subr.bf16.mxu0 %v440_v12  ;;  %449 = vmatprep.subr.bf16.mxu1 %v440_v12 }
   0xa   :  { %60 = vperm.xlu1 %457, %v21_v5   ;;  %36 = vperm.xlu0 %456, %v13_v8  }
   0xc   :  { %443 = vmatpush3.bf16.msra.mxu0 %v440_v12  ;;  %452 = vmatpush3.bf16.msra.mxu1 %v440_v12 }
   0xd   :  { %445 = vmatprep.subr.bf16.mxu0 %v444_v17  ;;  %450 = vmatprep.subr.bf16.mxu1 %v444_v17 }
   0xe   :  { %63 = vperm.xlu1 %457, %v22_v15   ;;  %39 = vperm.xlu0 %456, %v14_v16  }
  0x10   :  { %447 = vmatpush3.bf16.msra.mxu0 %v444_v17  ;;  %453 = vmatpush3.bf16.msra.mxu1 %v444_v17 }
  0x12   :  { %66 = vperm.xlu1 %457, %v23_v18   ;;  %42 = vperm.xlu0 %456, %v15_v19  }
  0x16   :  { %69 = vperm.xlu1 %457, %v24_v20   ;;  %45 = vperm.xlu0 %456, %v16_v21  }
  0x1a   :  { %72 = vperm.xlu1 %457, %v25_v22   ;;  %48 = vperm.xlu0 %456, %v17_v23  }
  0x1e   :  { %75 = vperm.xlu1 %457, %v26_v24   ;;  %51 = vperm.xlu0 %456, %v18_v25  }
  0x81   :  { %v34_v28 = vpop.permute.xlu1 %33  ;;  %v31_v29 = vpop.permute.xlu0 %30 }
  0x82   :  { %vm78_vm1 = vcmp.eq.s32.totalorder %v34_v28, %v541_v27  ;;  %vm77_vm2 = vcmp.eq.s32.totalorder %v31_v29, %v541_v27 }
  0x83   :  { %v347_v31 = vsel %vm78_vm1, 1.0, %v459_v30  ;;  %v346_v32 = vsel %vm77_vm2, 1.0, %v459_v30  ;;  %vm325_vm2 = vcmask 261120  }
  0x84   :  { %412 = vmatprep.mubr.msk.f32.mxu0 %vm131_vm0, %v346_v32 }
  0x85   :  { %v58_v33 = vpop.permute.xlu1 %57  ;;  %413 = vmatmul.mubr.msk.f32.vlgmr.msra.gmra.mrb[0].mxu0 %vm131_vm0, %v347_v31  ;;  %v55_v34 = vpop.permute.xlu0 %54 }
  0x86   :  { %vm86_vm3 = vcmp.eq.s32.totalorder %v58_v33, %v541_v27  ;;  %vm85_vm4 = vcmp.eq.s32.totalorder %v55_v34, %v541_v27 }
  0x87   :  { %v355_v35 = vsel %vm86_vm3, 1.0, %v459_v30  ;;  %v354_v36 = vsel %vm85_vm4, 1.0, %v459_v30 }
  0x88   :  { %424 = vmatprep.mubr.msk.f32.mxu1 %vm131_vm0, %v354_v36 }
  0x89   :  { %v61_v37 = vpop.permute.xlu1 %60  ;;  %425 = vmatmul.mubr.msk.f32.vlgmr.msra.gmra.mrb[0].mxu1 %vm131_vm0, %v355_v35  ;;  %v37_v38 = vpop.permute.xlu0 %36 }
  0x8a   :  { %vm87_vm5 = vcmp.eq.s32.totalorder %v61_v37, %v541_v27  ;;  %vm79_vm6 = vcmp.eq.s32.totalorder %v37_v38, %v541_v27 }
  0x8b   :  { %v356_v39 = vsel %vm87_vm5, 1.0, %v459_v30  ;;  %v348_v40 = vsel %vm79_vm6, 1.0, %v459_v30 }
  0x8c   :  { %415 = vmatprep.mubr.msk.f32.mxu0 %vm131_vm0, %v348_v40  ;;  %427 = vmatprep.mubr.msk.f32.mxu1 %vm131_vm0, %v356_v39 }
  0x8d   :  { %v64_v41 = vpop.permute.xlu1 %63  ;;  %v40_v42 = vpop.permute.xlu0 %39 }
  0x8e   :  { %vm88_vm7 = vcmp.eq.s32.totalorder %v64_v41, %v541_v27  ;;  %vm80_vm8 = vcmp.eq.s32.totalorder %v40_v42, %v541_v27 }
  0x8f   :  { %v357_v43 = vsel %vm88_vm7, 1.0, %v459_v30  ;;  %v349_v44 = vsel %vm80_vm8, 1.0, %v459_v30 }
  0x90   :  { %416 = vmatmul.mubr.msk.f32.gmra.mrb[2].mxu0 %vm131_vm0, %v349_v44  ;;  %428 = vmatmul.mubr.msk.f32.gmra.mrb[2].mxu1 %vm131_vm0, %v357_v43 }
  0x91   :  { %v67_v45 = vpop.permute.xlu1 %66  ;;  %v43_v46 = vpop.permute.xlu0 %42 }
  0x92   :  { %vm89_vm9 = vcmp.eq.s32.totalorder %v67_v45, %v541_v27  ;;  %vm81_vm10 = vcmp.eq.s32.totalorder %v43_v46, %v541_v27 }
  0x93   :  { %v358_v47 = vsel %vm89_vm9, 1.0, %v459_v30  ;;  %v350_v48 = vsel %vm81_vm10, 1.0, %v459_v30 }
  0x94   :  { %418 = vmatprep.mubr.msk.f32.mxu0 %vm131_vm0, %v350_v48  ;;  %430 = vmatprep.mubr.msk.f32.mxu1 %vm131_vm0, %v358_v47 }
  0x95   :  { %v70_v49 = vpop.permute.xlu1 %69  ;;  %v46_v50 = vpop.permute.xlu0 %45 }
  0x96   :  { %vm90_vm11 = vcmp.eq.s32.totalorder %v70_v49, %v541_v27  ;;  %vm82_vm12 = vcmp.eq.s32.totalorder %v46_v50, %v541_v27 }
  0x97   :  { %v359_v51 = vsel %vm90_vm11, 1.0, %v459_v30  ;;  %v351_v52 = vsel %vm82_vm12, 1.0, %v459_v30 }
  0x98   :  { %419 = vmatmul.mubr.msk.f32.gmra.mrb[4].mxu0 %vm131_vm0, %v351_v52  ;;  %431 = vmatmul.mubr.msk.f32.gmra.mrb[4].mxu1 %vm131_vm0, %v359_v51 }
  0x99   :  { %v73_v53 = vpop.permute.xlu1 %72  ;;  %v49_v54 = vpop.permute.xlu0 %48 }
  0x9a   :  { %vm91_vm13 = vcmp.eq.s32.totalorder %v73_v53, %v541_v27  ;;  %vm83_vm14 = vcmp.eq.s32.totalorder %v49_v54, %v541_v27 }
  0x9b   :  { %v360_v55 = vsel %vm91_vm13, 1.0, %v459_v30  ;;  %v352_v56 = vsel %vm83_vm14, 1.0, %v459_v30 }
  0x9c   :  { %421 = vmatprep.mubr.msk.f32.mxu0 %vm131_vm0, %v352_v56  ;;  %433 = vmatprep.mubr.msk.f32.mxu1 %vm131_vm0, %v360_v55 }
  0x9d   :  { %v76_v57 = vpop.permute.xlu1 %75  ;;  %v52_v58 = vpop.permute.xlu0 %51 }
  0x9e   :  { %vm92_vm15 = vcmp.eq.s32.totalorder %v76_v57, %v541_v27  ;;  %vm84_vm1 = vcmp.eq.s32.totalorder %v52_v58, %v541_v27 }
  0x9f   :  { %v361_v59 = vsel %vm92_vm15, 1.0, %v459_v30  ;;  %v353_v60 = vsel %vm84_vm1, 1.0, %v459_v30 }
  0xa0   :  { %422 = vmatmul.mubr.msk.f32.gmra.mrb[6].mxu0 %vm131_vm0, %v353_v60  ;;  %434 = vmatmul.mubr.msk.f32.gmra.mrb[6].mxu1 %vm131_vm0, %v361_v59 }
 0x158   :  { %v414_v61 = vpop.f32.mrb[0].mxu0 }
 0x159   :  { %327 = vst.msk [vmem:[%s641_s2 + $0x8] sm:$0xff] %vm325_vm2, %v414_v61  ;;  %v246_v62 = vpop.f32.mrb[1].mxu0 }
 0x15a   :  { %326 = vst.msk [vmem:[%s641_s2] sm:$0xff] %vm325_vm2, %v246_v62 }
 0x15c   :  { %v426_v63 = vpop.f32.mrb[0].mxu1 }
 0x15d   :  { %335 = vst.msk [vmem:[%s641_s2 + $0x48] sm:$0xff] %vm325_vm2, %v426_v63  ;;  %v286_v0 = vpop.f32.mrb[1].mxu1 }
 0x15e   :  { %334 = vst.msk [vmem:[%s641_s2 + $0x40] sm:$0xff] %vm325_vm2, %v286_v0 }
 0x163   :  { %v417_v1 = vpop.f32.mrb[2].mxu0  ;;  %v429_v2 = vpop.f32.mrb[2].mxu1 }
 0x164   :  { %329 = vst.msk [vmem:[%s641_s2 + $0x18] sm:$0xff] %vm325_vm2, %v417_v1  ;;  %337 = vst.msk [vmem:[%s641_s2 + $0x58] sm:$0xff] %vm325_vm2, %v429_v2  ;;  %v256_v3 = vpop.f32.mrb[3].mxu0  ;;  %v296_v4 = vpop.f32.mrb[3].mxu1 }
 0x165   :  { %328 = vst.msk [vmem:[%s641_s2 + $0x10] sm:$0xff] %vm325_vm2, %v256_v3  ;;  %336 = vst.msk [vmem:[%s641_s2 + $0x50] sm:$0xff] %vm325_vm2, %v296_v4 }
 0x16b   :  { %v420_v5 = vpop.f32.mrb[4].mxu0  ;;  %v432_v6 = vpop.f32.mrb[4].mxu1 }
 0x16c   :  { %331 = vst.msk [vmem:[%s641_s2 + $0x28] sm:$0xff] %vm325_vm2, %v420_v5  ;;  %339 = vst.msk [vmem:[%s641_s2 + $0x68] sm:$0xff] %vm325_vm2, %v432_v6  ;;  %v266_v7 = vpop.f32.mrb[5].mxu0  ;;  %v306_v8 = vpop.f32.mrb[5].mxu1 }
 0x16d   :  { %330 = vst.msk [vmem:[%s641_s2 + $0x20] sm:$0xff] %vm325_vm2, %v266_v7  ;;  %338 = vst.msk [vmem:[%s641_s2 + $0x60] sm:$0xff] %vm325_vm2, %v306_v8 }
 0x173   :  { %v423_v9 = vpop.f32.mrb[6].mxu0  ;;  %v435_v10 = vpop.f32.mrb[6].mxu1 }
 0x174   :  { %333 = vst.msk [vmem:[%s641_s2 + $0x38] sm:$0xff] %vm325_vm2, %v423_v9  ;;  %341 = vst.msk [vmem:[%s641_s2 + $0x78] sm:$0xff] %vm325_vm2, %v435_v10  ;;  %v276_v11 = vpop.f32.mrb[7].mxu0  ;;  %v316_v12 = vpop.f32.mrb[7].mxu1 }
 0x175   :  { %332 = vst.msk [vmem:[%s641_s2 + $0x30] sm:$0xff] %vm325_vm2, %v276_v11  ;;  %340 = vst.msk [vmem:[%s641_s2 + $0x70] sm:$0xff] %vm325_vm2, %v316_v12 }

// kernel: mf_forward.5
= control target key start
LH: loop header
LB: loop body
LE: loop exit
PB: predicated region body
PF: predicated region fallthrough
CT: control target
= control target key end

     0   :  { %vm29_vm0 = vcmask 261120   ;;  %v295_v2 = vmov 0.0|0.0   ;;  %vm296_vm2 = vmmov 0   ;;  %v297_v5 = vmov 0.0   ;;  %s400_s0 = inlined_call_operand.vmem [shape: f32[8,32], index: 0, kind: input, shape index: {}]   ;;  %s401_s1 = inlined_call_operand.vmem [shape: f32[128,32], index: 1, kind: input, shape index: {}]   ;;  %s402_s2 = inlined_call_operand.hbm [shape: f32[8,128], index: 2, kind: output, shape index: {}]  }
   0x1   :  { %v13_v0 = vld [vmem:[%s401_s1] sm:$0xff]  ;;  %v14_v1 = vld [vmem:[%s401_s1 + $0x8] sm:$0xff]  ;;  %235 = vmatprep.subr.bf16.mxu0 %v295_v2  ;;  %vm322_vm1 = vmpackc.low %vm29_vm0, %vm29_vm0  ;;  %232 = vmatprep.mubr.msk.f32.mxu0 %vm296_vm2, %v297_v5 }
   0x2   :  { %v236_v3 = vpack.c.bf16 %v14_v1, %v13_v0  ;;  %v15_v6 = vld [vmem:[%s401_s1 + $0x10] sm:$0xff]  ;;  %v16_v7 = vld [vmem:[%s401_s1 + $0x18] sm:$0xff] }
   0x4   :  { %238 = vmatpush3.bf16.xpose.msk.msra.mxu0 %vm322_vm1, %v236_v3 }
   0x5   :  { %239 = vmatprep.subr.bf16.mxu0 %v295_v2 }
   0x6   :  { %7 = vsyncpa [#allocation3], 0  ;;  %v240_v8 = vpack.c.bf16 %v16_v7, %v15_v6  ;;  %v17_v9 = vld [vmem:[%s401_s1 + $0x20] sm:$0xff]  ;;  %v18_v10 = vld [vmem:[%s401_s1 + $0x28] sm:$0xff]  ;;  %s298_s15 = smov [#allocation2]  }
   0x7   :  { %v244_v11 = vpack.c.bf16 %v18_v10, %v17_v9  ;;  %v19_v12 = vld [vmem:[%s401_s1 + $0x30] sm:$0xff]  ;;  %v20_v13 = vld [vmem:[%s401_s1 + $0x38] sm:$0xff]  ;;  %v21_v15 = vld [vmem:[%s401_s1 + $0x40] sm:$0xff]  ;;  %s158_s16 = sshll.u32 %s298_s15, 4  ;;  %s159_s16 = int_to_ptr.vmem [resolvable:$true] %s158_s16 }
   0x8   :  { %v248_v14 = vpack.c.bf16 %v20_v13, %v19_v12  ;;  %v22_v16 = vld [vmem:[%s401_s1 + $0x48] sm:$0xff]  ;;  %v23_v18 = vld [vmem:[%s401_s1 + $0x50] sm:$0xff]  ;;  %v24_v19 = vld [vmem:[%s401_s1 + $0x58] sm:$0xff]  ;;  %s271_s17 = scalar_lea.vmem %s159_s16, 128  ;;  %p276_p1 = scmp.lt.s32.totalorder %s159_s16, %s159_s16 }
   0x9   :  { %v252_v17 = vpack.c.bf16 %v22_v16, %v21_v15  ;;  %v256_v20 = vpack.c.bf16 %v24_v19, %v23_v18  ;;  %v25_v21 = vld [vmem:[%s401_s1 + $0x60] sm:$0xff]  ;;  %v26_v22 = vld [vmem:[%s401_s1 + $0x68] sm:$0xff]  ;;  %v27_v24 = vld [vmem:[%s401_s1 + $0x70] sm:$0xff]  ;;  %p272_p0 = scmp.ne.s32.totalorder %s159_s16, %s271_s17  ;;  %p277_p2 = scmp.lt.s32.totalorder %s271_s17, %s271_s17 }
   0xa   :  { %v260_v23 = vpack.c.bf16 %v26_v22, %v25_v21  ;;  %v28_v25 = vld [vmem:[%s401_s1 + $0x78] sm:$0xff]  ;;  %v12_v27 = vld [vmem:[%s400_s0] sm:$0xff] }
   0xb   :  { %v264_v26 = vpack.c.bf16 %v28_v25, %v27_v24  ;;  %p278_p3 = por %p277_p2, %p276_p1 }
   0xc   :  { %242 = vmatpush3.bf16.xpose.msk.msra.mxu0 %vm322_vm1, %v240_v8 }
   0xd   :  { %243 = vmatprep.subr.bf16.mxu0 %v295_v2  ;;  %p279_p4 = pnand %p278_p3, %p272_p0 }
  0x14   :  { %246 = vmatpush3.bf16.xpose.msk.msra.mxu0 %vm322_vm1, %v244_v11 }
  0x15   :  { %247 = vmatprep.subr.bf16.mxu0 %v295_v2 }
  0x1c   :  { %250 = vmatpush3.bf16.xpose.msk.msra.mxu0 %vm322_vm1, %v248_v14 }
  0x1d   :  { %251 = vmatprep.subr.bf16.mxu0 %v295_v2 }
  0x24   :  { %254 = vmatpush3.bf16.xpose.msk.msra.mxu0 %vm322_vm1, %v252_v17 }
  0x25   :  { %255 = vmatprep.subr.bf16.mxu0 %v295_v2 }
  0x2c   :  { %258 = vmatpush3.bf16.xpose.msk.msra.mxu0 %vm322_vm1, %v256_v20 }
  0x2d   :  { %259 = vmatprep.subr.bf16.mxu0 %v295_v2 }
  0x34   :  { %262 = vmatpush3.bf16.xpose.msk.msra.mxu0 %vm322_vm1, %v260_v23 }
  0x35   :  { %263 = vmatprep.subr.bf16.mxu0 %v295_v2 }
  0x3c   :  { %266 = vmatpush3.bf16.xpose.msk.msra.mxu0 %vm322_vm1, %v264_v26 }
  0x43   :  { %233 = vmatmul.mubr.msk.f32.vlgmr.msra.gmra.mrb[0].mxu0 %vm29_vm0, %v12_v27 }
 0x116   :  { %v147_v28 = vpop.f32.mrb[0].mxu0 }
 0x117   :  { %151 = vst [vmem:[#allocation2] sm:$0xff] %v147_v28  ;;  %v234_v29 = vpop.f32.mrb[1].mxu0 }
 0x118   :  { %282 = shalt.err (!%p279_p4)
}
 0x119   :  { %s283_s19 = scalar_lea.hbm %s402_s2, 128 }
 0x11a   :  { %p284_p5 = scmp.ne.s32.totalorder %s402_s2, %s283_s19  ;;  %p287_p6 = scmp.lt.u32.totalorder %s283_s19, %s402_s2 }
 0x11c   :  { %p289_p7 = pnand %p287_p6, %p284_p5 }
 0x11e   :  { %292 = shalt.err (!%p289_p7)
}
 0x11f   :  { %161 = dma.vmem_to_hbm [thread:$0]  %s159_s16, 128, %s402_s2, [#allocation3]  }
 0x120   :  { %293 = dma.done.wait [#allocation3], 128  }
 0x121   :  { %294 = vsyncadd [#allocation3], 4294967168 }
 0x122   :  { %165 = vsyncpa [#allocation3], 1 }

</bundles_post_ra>
